<compile_context>
chip_gen: v7x
topology: tpu7x:2x2x1
jax: 0.10.0
libtpu: 0.0.40
codegen_flags: <defaults>
</compile_context>

<pallas_src>
import jax
import jax.numpy as jnp
import numpy as np
from jax.experimental import pallas as pl
from jax.experimental.pallas import tpu as pltpu

# ---------- problem sizes (from the PyTorch module) ----------
N_NODES = 4          # graph nodes
F_IN    = 2          # GCNConv(2, 4) input features
F_HID   = 4          # hidden features
F_OUT   = 2          # output classes

# ---------- padded sizes ----------
NP   = 8             # nodes 4 -> 8 (sublane multiple; rows 4/5 are phantom bias nodes)
FI_P = 8             # input features 2 -> 8 (cols 2/3 = bias / indicator features)
FH_P = 8             # hidden features 4 -> 8 (col 4 = bias-indicator channel)
FO_P = 128           # output classes 2 -> 128 (lane-dense output block)

assert NP == FI_P == FH_P, "packed (3, 8, 8) operand relies on these being equal"

BIAS_FEAT  = F_IN        # input column carrying the "bias" feature        (== 2)
IND_FEAT   = F_IN + 1    # input column carrying the "indicator" feature   (== 3)
HIDDEN_IND = F_HID       # hidden column carrying the unit indicator       (== 4)
BIAS_NODE  = N_NODES     # phantom node broadcasting the biases            (== 4)
IND_NODE   = N_NODES + 1 # phantom node seeding the indicator              (== 5)


def gnn_kernel(packed_ref, w2_ref, o_ref):
    """Whole 2-layer GCN forward; A@X and both biases are pre-folded host-side."""
    a  = packed_ref[0]        # (NP, NP)   A_hat padded, +b routing via column 4
    ax = packed_ref[1]        # (NP, FI_P) A_p @ X_p (host-folded)
    w1 = packed_ref[2]        # (FI_P, FH_P) W1 padded, b1 folded in

    # conv1: relu(A_hat @ X @ W1 + b1)  ==  relu(AX @ W1_p)
    h = jnp.maximum(jnp.dot(ax, w1, preferred_element_type=jnp.float32), 0.0)

    # conv2: A_hat @ H @ W2 + b2        (b2 folded via hidden indicator column)
    m2 = jnp.dot(h, w2_ref[...], preferred_element_type=jnp.float32)   # (NP, FO_P)
    z  = jnp.dot(a, m2, preferred_element_type=jnp.float32)            # (NP, FO_P)

    # Lane-local 2-class log_softmax.  Padded class columns of z are exactly 0,
    # so roll(z,1)+roll(z,127) leaves the *other* real class's logit in lanes
    # 0 and 1 (direction-convention agnostic).  Only lanes 0..F_OUT-1 are kept
    # by the wrapper; the rest are harmless finite filler.
    other = pltpu.roll(z, 1, axis=1) + pltpu.roll(z, 127, axis=1)
    m   = jnp.maximum(z, other)
    lse = m + jnp.log(1.0 + jnp.exp(-jnp.abs(z - other)))
    o_ref[...] = z - lse


def _full_spec(shape):
    return pl.BlockSpec(shape, lambda: (0,) * len(shape))


_COST = pl.CostEstimate(flops=34_000, transcendentals=2_100, bytes_accessed=9_000)


@jax.jit
def gcn_forward_pallas(packed, w2_p):
    """Runs the Pallas kernel on pre-folded operands, slices the real output."""
    out_p = pl.pallas_call(
        gnn_kernel,
        out_shape=jax.ShapeDtypeStruct((NP, FO_P), jnp.float32),
        in_specs=[
            _full_spec((3, NP, FI_P)),   # stacked [A_hat_p, A_p @ X_p, W1_p]
            _full_spec((FH_P, FO_P)),    # W2_p (b2 folded in)
        ],
        out_specs=_full_spec((NP, FO_P)),
        cost_estimate=_COST,
    )(packed, w2_p)
    return out_p[:N_NODES, :F_OUT]


def build_normalized_adjacency(edge_index, num_nodes):
    """A_hat = D^{-1/2} (A + I) D^{-1/2}, dense (num_nodes x num_nodes), host-side."""
    src, dst = edge_index[0], edge_index[1]
    a = np.zeros((num_nodes, num_nodes), np.float32)
    a[dst, src] = 1.0                                   # message src -> dst
    a += np.eye(num_nodes, dtype=np.float32)            # self-loops
    deg = a.sum(axis=1)
    dinv = np.where(deg > 0, 1.0 / np.sqrt(deg), 0.0).astype(np.float32)
    return dinv[:, None] * a * dinv[None, :]


def build_folded_operands(x, a_hat, w1, b1, w2, b2):
    """Pad to TPU tiles, fold b1/b2 via phantom nodes, host-fold AX = A_p @ X_p,
    and stack the three tiny (8,8) operands into one (3,8,8) block (done once)."""
    a_p = np.zeros((NP, NP), np.float32)
    a_p[:N_NODES, :N_NODES] = np.asarray(a_hat, np.float32)
    a_p[:N_NODES, BIAS_NODE] = 1.0          # every real row picks up +b1 / +b2
    a_p[BIAS_NODE, IND_NODE] = 1.0          # bias node's hidden state becomes e_{HIDDEN_IND}

    x_p = np.zeros((NP, FI_P), np.float32)
    x_p[:N_NODES, :F_IN] = np.asarray(x, np.float32)
    x_p[BIAS_NODE, BIAS_FEAT] = 1.0
    x_p[IND_NODE, IND_FEAT] = 1.0

    ax_p = a_p @ x_p                         # host fold: removes one in-kernel MXU op

    w1_p = np.zeros((FI_P, FH_P), np.float32)
    w1_p[:F_IN, :F_HID] = np.asarray(w1, np.float32)
    w1_p[BIAS_FEAT, :F_HID] = np.asarray(b1, np.float32)   # bias feature -> b1
    w1_p[IND_FEAT, HIDDEN_IND] = 1.0                        # indicator feature -> e_4

    w2_p = np.zeros((FH_P, FO_P), np.float32)
    w2_p[:F_HID, :F_OUT] = np.asarray(w2, np.float32)
    w2_p[HIDDEN_IND, :F_OUT] = np.asarray(b2, np.float32)   # indicator channel -> b2

    packed = np.stack([a_p, ax_p, w1_p], axis=0)             # (3, 8, 8), one DMA
    return jnp.asarray(packed), jnp.asarray(w2_p)


def reference_forward(x, a_hat, w1, b1, w2, b2):
    h = jnp.maximum(a_hat @ (x @ w1) + b1, 0.0)
    z = a_hat @ (h @ w2) + b2
    return jax.nn.log_softmax(z, axis=1)


# TODO(synk): for real graph sizes (N >> 4) restructure as a grid over node-row
# tiles (leading "parallel" axis so both v7x TensorCores are used) with an
# "arbitrary" reduction axis over A_hat column tiles, and re-derive tile sizes
# against v7x's 64 MiB VMEM; unnecessary at N = 4.

if __name__ == "__main__":
    # Graph data from the PyTorch script (deterministic).
    edge_index = np.array([[0, 1, 1, 2, 2, 3],
                           [1, 0, 2, 1, 3, 2]], dtype=np.int32)
    x = np.array([[1.0, 0.0],
                  [0.0, 1.0],
                  [1.0, 1.0],
                  [0.0, 0.0]], dtype=np.float32)

    a_hat = build_normalized_adjacency(edge_index, N_NODES)

    # Deterministic parameters (glorot-style weights as in GCNConv; small nonzero
    # biases so the folded-bias path is actually exercised by the check).
    key = jax.random.PRNGKey(0)
    k1, k2, k3, k4 = jax.random.split(key, 4)
    s1 = float(np.sqrt(6.0 / (F_IN + F_HID)))
    s2 = float(np.sqrt(6.0 / (F_HID + F_OUT)))
    w1 = jax.random.uniform(k1, (F_IN, F_HID), jnp.float32, -s1, s1)
    w2 = jax.random.uniform(k2, (F_HID, F_OUT), jnp.float32, -s2, s2)
    b1 = 0.1 * jax.random.normal(k3, (F_HID,), jnp.float32)
    b2 = 0.1 * jax.random.normal(k4, (F_OUT,), jnp.float32)

    # Padded / folded / packed operands are built exactly once and reused.
    packed, w2_p = build_folded_operands(x, a_hat, w1, b1, w2, b2)

    out = gcn_forward_pallas(packed, w2_p)
    out = jax.block_until_ready(out)

    ref = reference_forward(jnp.asarray(x), jnp.asarray(a_hat), w1, b1, w2, b2)
    np.testing.assert_allclose(np.asarray(out), np.asarray(ref), rtol=1e-5, atol=1e-5)

    print("KERNEL_OK")
</pallas_src>

<mosaic_0001>
module attributes {stable_mosaic.version = 11 : i64} {
  func.func @gnn_kernel(%arg0: memref<3x8x8xf32, #tpu.memory_space<vmem>>, %arg1: memref<8x128xf32, #tpu.memory_space<vmem>>, %arg2: memref<8x128xf32, #tpu.memory_space<vmem>>) attributes {dimension_semantics = [], scalar_prefetch = 0 : i64, scratch_operands = 0 : i64, tpu.core_type = #tpu.core_type<tc>} {
    %c0 = arith.constant 0 : index
    %c0_0 = arith.constant 0 : index
    %c0_1 = arith.constant 0 : index
    %0 = vector.load %arg0[%c0, %c0_0, %c0_1] : memref<3x8x8xf32, #tpu.memory_space<vmem>>, vector<1x8x8xf32>
    %1 = vector.shape_cast %0 : vector<1x8x8xf32> to vector<8x8xf32>
    %c1 = arith.constant 1 : index
    %c0_2 = arith.constant 0 : index
    %c0_3 = arith.constant 0 : index
    %2 = vector.load %arg0[%c1, %c0_2, %c0_3] : memref<3x8x8xf32, #tpu.memory_space<vmem>>, vector<1x8x8xf32>
    %3 = vector.shape_cast %2 : vector<1x8x8xf32> to vector<8x8xf32>
    %c2 = arith.constant 2 : index
    %c0_4 = arith.constant 0 : index
    %c0_5 = arith.constant 0 : index
    %4 = vector.load %arg0[%c2, %c0_4, %c0_5] : memref<3x8x8xf32, #tpu.memory_space<vmem>>, vector<1x8x8xf32>
    %5 = vector.shape_cast %4 : vector<1x8x8xf32> to vector<8x8xf32>
    %cst = arith.constant dense<0.000000e+00> : vector<8x8xf32>
    %6 = tpu.matmul %3, %5, %cst {dimension_numbers = #tpu.dot_dimension_numbers<[1], [0], [0], [1], [0, 0, 1, 1], [], []>} : vector<8x8xf32>, vector<8x8xf32>, vector<8x8xf32> -> vector<8x8xf32>
    %cst_6 = arith.constant 0.000000e+00 : f32
    %7 = vector.broadcast %cst_6 : f32 to vector<8x8xf32>
    %8 = arith.maximumf %6, %7 : vector<8x8xf32>
    %c0_7 = arith.constant 0 : index
    %c0_8 = arith.constant 0 : index
    %9 = vector.load %arg1[%c0_7, %c0_8] : memref<8x128xf32, #tpu.memory_space<vmem>>, vector<8x128xf32>
    %cst_9 = arith.constant dense<0.000000e+00> : vector<8x128xf32>
    %10 = tpu.matmul %8, %9, %cst_9 {dimension_numbers = #tpu.dot_dimension_numbers<[1], [0], [0], [1], [0, 0, 1, 1], [], []>} : vector<8x8xf32>, vector<8x128xf32>, vector<8x128xf32> -> vector<8x128xf32>
    %cst_10 = arith.constant dense<0.000000e+00> : vector<8x128xf32>
    %11 = tpu.matmul %1, %10, %cst_10 {dimension_numbers = #tpu.dot_dimension_numbers<[1], [0], [0], [1], [0, 0, 1, 1], [], []>} : vector<8x8xf32>, vector<8x128xf32>, vector<8x128xf32> -> vector<8x128xf32>
    %c1_i32 = arith.constant 1 : i32
    %12 = tpu.dynamic_rotate %11 by %c1_i32 dim 1 : vector<8x128xf32>, i32 -> vector<8x128xf32>
    %c127_i32 = arith.constant 127 : i32
    %13 = tpu.dynamic_rotate %11 by %c127_i32 dim 1 : vector<8x128xf32>, i32 -> vector<8x128xf32>
    %14 = arith.addf %12, %13 : vector<8x128xf32>
    %15 = arith.maximumf %11, %14 : vector<8x128xf32>
    %16 = arith.subf %11, %14 : vector<8x128xf32>
    %17 = math.absf %16 : vector<8x128xf32>
    %cst_11 = arith.constant 0.000000e+00 : f32
    %18 = vector.broadcast %cst_11 : f32 to vector<8x128xf32>
    %19 = arith.subf %18, %17 : vector<8x128xf32>
    %20 = math.exp %19 : vector<8x128xf32>
    %cst_12 = arith.constant 1.000000e+00 : f32
    %21 = vector.broadcast %cst_12 : f32 to vector<8x128xf32>
    %22 = arith.addf %21, %20 : vector<8x128xf32>
    %23 = math.log %22 : vector<8x128xf32>
    %24 = arith.addf %15, %23 : vector<8x128xf32>
    %25 = arith.subf %11, %24 : vector<8x128xf32>
    %c0_13 = arith.constant 0 : index
    %c0_14 = arith.constant 0 : index
    %26 = vector.load %arg2[%c0_13, %c0_14] : memref<8x128xf32, #tpu.memory_space<vmem>>, vector<8x128xf32>
    tpu.vector_store %arg2[%c0_13, %c0_14], %25 {strides = array<i32>} : memref<8x128xf32, #tpu.memory_space<vmem>>, vector<8x128xf32>,
    return
  }
}

</mosaic_0001>

<bundles_post_ra>
// kernel: gcn_forward_pallas.1
= control target key start
LH: loop header
LB: loop body
LE: loop exit
PB: predicated region body
PF: predicated region fallthrough
CT: control target
= control target key end

     0   :  { %7 = vsyncpa [#allocation3], 0  ;;  %s424_s0 = inlined_call_operand.hbm [shape: f32[3,8,8], index: 0, kind: input, shape index: {}]   ;;  %s425_s1 = inlined_call_operand.hbm [shape: f32[8,128], index: 1, kind: input, shape index: {}]   ;;  %s426_s2 = inlined_call_operand.vmem [shape: f32[8,128], index: 2, kind: output, shape index: {}]  }
   0x1   :  { %8 = vsyncpa [#allocation5], 0  ;;  %s371_s9 = smov [#allocation2]   ;;  %s323_s13 = scalar_lea.hbm %s424_s0, 384 }
   0x2   :  { %s14_s10 = sshll.u32 %s371_s9, 4  ;;  %p324_p0 = scmp.ne.s32.totalorder %s424_s0, %s323_s13  ;;  %s15_s10 = int_to_ptr.vmem [resolvable:$true] %s14_s10 }
   0x3   :  { %p327_p1 = scmp.lt.u32.totalorder %s323_s13, %s424_s0 }
   0x5   :  { %p329_p2 = pnand %p327_p1, %p324_p0 }
   0x7   :  { %332 = shalt.err (!%p329_p2)
}
   0x8   :  { %s333_s18 = scalar_lea.vmem %s15_s10, 384  ;;  %p338_p4 = scmp.lt.s32.totalorder %s15_s10, %s15_s10 }
   0x9   :  { %p334_p3 = scmp.ne.s32.totalorder %s15_s10, %s333_s18  ;;  %p339_p5 = scmp.lt.s32.totalorder %s333_s18, %s333_s18 }
   0xb   :  { %p340_p6 = por %p339_p5, %p338_p4 }
   0xd   :  { %p341_p7 = pnand %p340_p6, %p334_p3 }
   0xf   :  { %344 = shalt.err (!%p341_p7)
}
  0x10   :  { %s372_s19 = smov 128   ;;  %s373_s20 = smov 8  }
  0x11   :  { %20 = dma.hbm_to_vmem [thread:$0]  %s424_s0, 384, %s15_s10, [#allocation3], %s372_s19, %s372_s19, %s373_s20  }
  0x12   :  { %s374_s23 = smov [#allocation4]   ;;  %s345_s27 = scalar_lea.hbm %s425_s1, 128 }
  0x13   :  { %s27_s24 = sshll.u32 %s374_s23, 4  ;;  %p346_p8 = scmp.ne.s32.totalorder %s425_s1, %s345_s27  ;;  %s28_s24 = int_to_ptr.vmem [resolvable:$true] %s27_s24 }
  0x14   :  { %p349_p9 = scmp.lt.u32.totalorder %s345_s27, %s425_s1 }
  0x16   :  { %p351_p10 = pnand %p349_p9, %p346_p8 }
  0x18   :  { %354 = shalt.err (!%p351_p10)
}
  0x19   :  { %s355_s4 = scalar_lea.vmem %s28_s24, 128  ;;  %p360_p12 = scmp.lt.s32.totalorder %s28_s24, %s28_s24 }
  0x1a   :  { %p356_p11 = scmp.ne.s32.totalorder %s28_s24, %s355_s4  ;;  %p361_p13 = scmp.lt.s32.totalorder %s355_s4, %s355_s4 }
  0x1c   :  { %p362_p0 = por %p361_p13, %p360_p12 }
  0x1e   :  { %p363_p1 = pnand %p362_p0, %p356_p11 }
  0x20   :  { %366 = shalt.err (!%p363_p1)
}
  0x21   :  { %30 = dma.hbm_to_vmem [thread:$0]  %s425_s1, 128, %s28_s24, [#allocation5]  }
  0x22   :  { %367 = dma.done.wait [#allocation3], 384  }
  0x23   :  { %368 = vsyncadd [#allocation3], 4294966912 }
  0x24   :  { %369 = dma.done.wait [#allocation5], 128  }
  0x25   :  { %370 = vsyncadd [#allocation5], 4294967168  ;;  %v375_v0 = vmov 0.0   ;;  %vm376_vm0 = vmmov 0   ;;  %vm42_vm1 = vcmask 64512   ;;  %v41_v1 = vld [vmem:[#allocation2 + $0x10] sm:$0xff] }
  0x26   :  { %296 = vmatprep.subr.mxu0 %v375_v0  ;;  %298 = vmatprep.mubr.msk.f32.mxu0 %vm376_vm0, %v375_v0  ;;  %v39_v2 = vld [vmem:[#allocation2 + $0x8] sm:$0xff]  ;;  %v117_v3 = vld [vmem:[#allocation4] sm:$0xff]  ;;  %v37_v7 = vld [vmem:[#allocation2] sm:$0xff]  ;;  %s377_s1 = smov 1   ;;  %s378_s6 = smov 127  }
  0x27   :  { %301 = vmatprep.subr.mxu1 %v375_v0  ;;  %303 = vmatprep.mubr.msk.f32.mxu1 %vm376_vm0, %v375_v0 }
  0x28   :  { %297 = vmatpush3.msra.mxu0 %v41_v1  ;;  %302 = vmatpush3.msra.mxu1 %v117_v3 }
  0x29   :  { %299 = vmatmul.mubr.msk.f32.vlgmr.msra.gmra.mrb[0].mxu0 %vm42_vm1, %v39_v2  ;;  %306 = vmatprep.subr.mxu0 %v375_v0 }
  0x2a   :  { %308 = vmatprep.mubr.msk.f32.mxu0 %vm376_vm0, %v375_v0 }
  0xfc   :  { %v112_v4 = vpop.f32.mrb[0].mxu0 }
  0xfd   :  { %v116_v5 = vmax.f32 %v112_v4, 0.0  ;;  %v300_v6 = vpop.f32.mrb[1].mxu0 }
  0xff   :  { %304 = vmatmul.mubr.msk.f32.vlgmr.msra.gmra.mrb[0].mxu1 %vm42_vm1, %v116_v5 }
 0x1d2   :  { %v187_v8 = vpop.f32.mrb[0].mxu1 }
 0x1d3   :  { %v305_v9 = vpop.f32.mrb[1].mxu1  ;;  %307 = vmatpush3.msra.mxu0 %v187_v8 }
 0x1d4   :  { %309 = vmatmul.mubr.msk.f32.vlgmr.msra.gmra.mrb[2].mxu0 %vm42_vm1, %v37_v7 }
 0x2a7   :  { %v260_v10 = vpop.f32.mrb[2].mxu0 }
 0x2a8   :  { %264 = vrot.lane.b32.xlu0 %v260_v10, %s377_s1  ;;  %v310_v11 = vpop.f32.mrb[3].mxu0 }
 0x2ac   :  { %266 = vrot.lane.b32.xlu0 %v260_v10, %s378_s6 }
 0x31a   :  { %v265_v12 = vpop.permute.xlu0 %264 }
 0x31e   :  { %v267_v13 = vpop.permute.xlu0 %266 }
 0x31f   :  { %v268_v14 = vadd.f32 %v267_v13, %v265_v12 }
 0x321   :  { %v270_v15 = vsub.f32 %v260_v10, %v268_v14  ;;  %v269_v22 = vmax.f32 %v260_v10, %v268_v14 }
 0x323   :  { %v271_v16 = vand.u32 2147483647, %v270_v15 }
 0x325   :  { %v272_v17 = vsub.f32 0.0, %v271_v16 }
 0x327   :  { %v273_v18 = vmul.f32 1.442695, %v272_v17 }
 0x329   :  { %319 = vpow2.f32 %v273_v18 }
 0x333   :  { %v320_v19 = vpop.eup %319 }
 0x334   :  { %v275_v20 = vadd.f32 1.0, %v320_v19 }
 0x336   :  { %321 = vlog2.f32 %v275_v20 }
 0x340   :  { %v322_v21 = vpop.eup %321 }
 0x341   :  { %v277_v23 = vmul.f32 0.6931472, %v322_v21 }
 0x343   :  { %v278_v24 = vadd.f32 %v277_v23, %v269_v22 }
 0x345   :  { %v279_v25 = vsub.f32 %v260_v10, %v278_v24 }
 0x347   :  { %280 = vst [vmem:[%s426_s2] sm:$0xff] %v279_v25 }
 0x348   :  { %285 = vsyncpa [#allocation3], 1 }
 0x349   :  { %286 = vsyncpa [#allocation5], 1 }

</bundles_post_ra>
